<compile_context>
chip_gen: v7x
topology: tpu7x:2x2x1
jax: 0.10.0
libtpu: 0.0.40
codegen_flags: <defaults>
</compile_context>

<pallas_src>
import functools

import jax
import jax.numpy as jnp
from jax import lax
from jax.experimental import pallas as pl
from jax.experimental.pallas import tpu as pltpu

BN_EPS_BASIC = 1e-3   # BatchNorm2d inside BasicConv2d uses eps=0.001
BN_EPS_FINAL = 1e-5   # final nn.BatchNorm2d uses the default eps=1e-5


# ----------------------------------------------------------------------------
# Fused Block kernel — one image per grid step, (C, H*W) lane-dense layout
# ----------------------------------------------------------------------------
def _block_kernel(mask_ref, x_ref,
                  w_in1, b_in1, w_in2, b_in2, w_in3, b_in3,
                  w_o1, b_o1, w_o2, b_o2, w_o3, b_o3,
                  o_ref, patch_ref, *, W):
    HW = x_ref.shape[-1]
    x = x_ref[0].astype(jnp.float32)                       # (Cin, HW) residual

    def conv1x1(a, w_ref, b_ref, relu=True):
        # (Cout, Cin)bf16 @ (Cin, HW)bf16 -> (Cout, HW)f32 + folded-BN bias
        acc = jnp.dot(w_ref[...], a.astype(jnp.bfloat16),
                      preferred_element_type=jnp.float32)
        acc = acc + b_ref[...]
        return jnp.maximum(acc, 0.0) if relu else acc

    def conv3x3(a, w_ref, b_ref):
        # im2col in VMEM: one XLU lane-roll + one VPU mask-multiply per tap,
        # written straight into the bf16 patch scratch; then a single MXU
        # matmul with K = 9*Cin. Masks are precomputed (resident input).
        c = a.shape[0]
        t = 0
        for dy in (-1, 0, 1):
            for dx in (-1, 0, 1):
                s = dy * W + dx                 # flat-index shift of this tap
                shifted = a if s == 0 else pltpu.roll(a, (-s) % HW, axis=1)
                patch_ref[pl.ds(t * c, c), :] = (
                    shifted * mask_ref[pl.ds(t, 1), :]).astype(jnp.bfloat16)
                t += 1
        acc = jnp.dot(w_ref[...], patch_ref[...],    # (Cout, 9*Cin) @ (9*Cin, HW)
                      preferred_element_type=jnp.float32)
        return jnp.maximum(acc + b_ref[...], 0.0)

    # in_layer: 1x1 -> 3x3(pad 1) -> 1x1, each conv + folded BN + ReLU
    h = conv1x1(x, w_in1, b_in1)
    h = conv3x3(h, w_in2, b_in2)
    h = conv1x1(h, w_in3, b_in3)
    # out_layer: 1x1+BN+ReLU -> 3x3+BN+ReLU -> 1x1 + BN (no ReLU)
    h = conv1x1(h, w_o1, b_o1)
    h = conv3x3(h, w_o2, b_o2)
    h = conv1x1(h, w_o3, b_o3, relu=False)
    # residual add + final ReLU, lane-dense store
    o_ref[0] = jnp.maximum(h + x, 0.0).astype(o_ref.dtype)


def build_border_masks(H, W):
    """(9, H*W) {0,1} masks, tap order (dy, dx) row-major — reused by both 3x3s."""
    hh = jnp.arange(H * W, dtype=jnp.int32) // W
    ww = jnp.arange(H * W, dtype=jnp.int32) % W
    rows = []
    for dy in (-1, 0, 1):
        for dx in (-1, 0, 1):
            valid = ((hh + dy >= 0) & (hh + dy < H) &
                     (ww + dx >= 0) & (ww + dx < W))
            rows.append(valid.astype(jnp.float32))
    return jnp.stack(rows, axis=0)


def block_forward(x_nchw, mask, kp):
    """Block.forward (dotted=False): relu(out_layer(in_layer(x)) + x)."""
    N, Cin, H, W = x_nchw.shape
    Cout = kp["o3_wt"].shape[0]
    planes = kp["in1_wt"].shape[0]
    assert Cin == Cout, "residual add requires in_channels == out_channels"
    HW = H * W

    x3 = x_nchw.reshape(N, Cin, HW)                 # free reshape, no transpose

    def resident(a):                                # same block every grid step
        nd = a.ndim
        return pl.BlockSpec(a.shape, lambda n, _nd=nd: (0,) * _nd)

    operands = [mask, x3,
                kp["in1_wt"], kp["in1_bt"], kp["in2_wt"], kp["in2_bt"],
                kp["in3_wt"], kp["in3_bt"],
                kp["o1_wt"], kp["o1_bt"], kp["o2_wt"], kp["o2_bt"],
                kp["o3_wt"], kp["o3_bt"]]

    in_specs = [resident(mask),
                pl.BlockSpec((1, Cin, HW), lambda n: (n, 0, 0))]
    in_specs += [resident(a) for a in operands[2:]]

    out = pl.pallas_call(
        functools.partial(_block_kernel, W=W),
        out_shape=jax.ShapeDtypeStruct((N, Cout, HW), x_nchw.dtype),
        grid=(N,),
        in_specs=in_specs,
        out_specs=pl.BlockSpec((1, Cout, HW), lambda n: (n, 0, 0)),
        scratch_shapes=[pltpu.VMEM((9 * planes, HW), jnp.bfloat16)],
        compiler_params=pltpu.CompilerParams(
            dimension_semantics=("parallel",),       # images independent; v7x 2 TCs
            vmem_limit_bytes=32 * 1024 * 1024),      # safe on v7x (64 MiB physical)
    )(*operands)
    return out.reshape(N, Cout, H, W)


# ----------------------------------------------------------------------------
# Parameters (deterministic synthetic init), BN folding, kernel layout
# ----------------------------------------------------------------------------
def _fold_bn(key, c, eps):
    kg, kb, km, kv = jax.random.split(key, 4)
    gamma = 1.0 + 0.1 * jax.random.normal(kg, (c,), jnp.float32)
    beta = 0.1 * jax.random.normal(kb, (c,), jnp.float32)
    mean = 0.1 * jax.random.normal(km, (c,), jnp.float32)
    var = jnp.abs(jax.random.normal(kv, (c,), jnp.float32)) + 0.5
    scale = gamma / jnp.sqrt(var + eps)
    bias = beta - mean * scale
    return scale, bias


def init_block_params(key, in_c, planes, out_c):
    ks = jax.random.split(key, 12)
    w1 = lambda k, ci, co: 0.1 * jax.random.normal(k, (ci, co), jnp.float32)
    w3 = lambda k, ci, co: 0.1 * jax.random.normal(k, (3, 3, ci, co), jnp.float32)
    p = {}
    # in_layer: 1x1 -> 3x3(pad 1) -> 1x1, each conv(bias=False)+BN(eps=1e-3)+ReLU
    p["in1_w"] = w1(ks[0], in_c, planes)
    p["in1_s"], p["in1_b"] = _fold_bn(ks[1], planes, BN_EPS_BASIC)
    p["in2_w"] = w3(ks[2], planes, planes)
    p["in2_s"], p["in2_b"] = _fold_bn(ks[3], planes, BN_EPS_BASIC)
    p["in3_w"] = w1(ks[4], planes, out_c)
    p["in3_s"], p["in3_b"] = _fold_bn(ks[5], out_c, BN_EPS_BASIC)
    # out_layer: 1x1+BN+ReLU -> 3x3+BN+ReLU -> 1x1(no bias) -> BN(eps=1e-5)
    p["o1_w"] = w1(ks[6], out_c, planes)
    p["o1_s"], p["o1_b"] = _fold_bn(ks[7], planes, BN_EPS_BASIC)
    p["o2_w"] = w3(ks[8], planes, planes)
    p["o2_s"], p["o2_b"] = _fold_bn(ks[9], planes, BN_EPS_BASIC)
    p["o3_w"] = w1(ks[10], planes, out_c)
    p["o3_s"], p["o3_b"] = _fold_bn(ks[11], out_c, BN_EPS_FINAL)
    return p


def prepare_kernel_params(p):
    """Fold BN scale into weights, transpose to (Cout, K) layout, cast to bf16."""
    def w1t(w, s):          # (Cin, Cout), (Cout,) -> (Cout, Cin) bf16
        return (w * s[None, :]).T.astype(jnp.bfloat16)

    def w3t(w, s):          # (3, 3, Cin, Cout) -> (Cout, 9*Cin) bf16, K=(kh,kw,cin)
        ws = w * s          # fold BN scale over Cout
        co = w.shape[-1]
        return jnp.transpose(ws, (3, 0, 1, 2)).reshape(co, -1).astype(jnp.bfloat16)

    def bt(b):              # (Cout,) -> (Cout, 1) f32 (broadcast along lanes)
        return b.reshape(-1, 1).astype(jnp.float32)

    return {
        "in1_wt": w1t(p["in1_w"], p["in1_s"]), "in1_bt": bt(p["in1_b"]),
        "in2_wt": w3t(p["in2_w"], p["in2_s"]), "in2_bt": bt(p["in2_b"]),
        "in3_wt": w1t(p["in3_w"], p["in3_s"]), "in3_bt": bt(p["in3_b"]),
        "o1_wt":  w1t(p["o1_w"],  p["o1_s"]),  "o1_bt":  bt(p["o1_b"]),
        "o2_wt":  w3t(p["o2_w"],  p["o2_s"]),  "o2_bt":  bt(p["o2_b"]),
        "o3_wt":  w1t(p["o3_w"],  p["o3_s"]),  "o3_bt":  bt(p["o3_b"]),
    }


# ----------------------------------------------------------------------------
# Pure-JAX reference (NCHW) for verification
# ----------------------------------------------------------------------------
def block_reference(x, p):
    def bn(y, s, b):
        return y * s[None, :, None, None] + b[None, :, None, None]

    def c1(x, w, s, b, relu=True):
        y = bn(jnp.einsum("nchw,cd->ndhw", x, w), s, b)
        return jnp.maximum(y, 0.0) if relu else y

    def c3(x, w, s, b):
        y = lax.conv_general_dilated(
            x, w, window_strides=(1, 1), padding="SAME",
            dimension_numbers=("NCHW", "HWIO", "NCHW"))
        return jnp.maximum(bn(y, s, b), 0.0)

    res = x
    o = c1(x, p["in1_w"], p["in1_s"], p["in1_b"])
    o = c3(o, p["in2_w"], p["in2_s"], p["in2_b"])
    o = c1(o, p["in3_w"], p["in3_s"], p["in3_b"])
    o = c1(o, p["o1_w"], p["o1_s"], p["o1_b"])
    o = c3(o, p["o2_w"], p["o2_s"], p["o2_b"])
    o = c1(o, p["o3_w"], p["o3_s"], p["o3_b"], relu=False)
    return jnp.maximum(o + res, 0.0)


if __name__ == "__main__":
    key = jax.random.PRNGKey(0)
    kx, kprm = jax.random.split(key)

    # Block(in_channels=8, planes=16, out_channels=8), NCHW input (2, 8, 8, 16)
    N, H, W = 2, 8, 16          # H*W = 128 -> full lane width per image tile
    in_c = out_c = 8            # residual add requires in_channels == out_channels
    planes = 16

    x = jax.random.normal(kx, (N, in_c, H, W), jnp.float32)
    params = init_block_params(kprm, in_c, planes, out_c)
    kparams = prepare_kernel_params(params)
    mask = build_border_masks(H, W)

    fwd = jax.jit(block_forward)
    out = jax.block_until_ready(fwd(x, mask, kparams))

    ref = block_reference(x, params)
    assert out.shape == (N, out_c, H, W)
    # bf16 matmul operands (f32 accumulation/epilogue) -> slightly looser tol
    assert jnp.allclose(out, ref, atol=2e-2, rtol=2e-2), "mismatch vs reference"

    print("KERNEL_OK")
</pallas_src>

<mosaic_0001>
module attributes {stable_mosaic.version = 11 : i64} {
  func.func @_block_kernel(%arg0: i32, %arg1: memref<9x128xf32, #tpu.memory_space<vmem>>, %arg2: memref<1x8x128xf32, #tpu.memory_space<vmem>>, %arg3: memref<16x8xbf16, #tpu.memory_space<vmem>>, %arg4: memref<16x1xf32, #tpu.memory_space<vmem>>, %arg5: memref<16x144xbf16, #tpu.memory_space<vmem>>, %arg6: memref<16x1xf32, #tpu.memory_space<vmem>>, %arg7: memref<8x16xbf16, #tpu.memory_space<vmem>>, %arg8: memref<8x1xf32, #tpu.memory_space<vmem>>, %arg9: memref<16x8xbf16, #tpu.memory_space<vmem>>, %arg10: memref<16x1xf32, #tpu.memory_space<vmem>>, %arg11: memref<16x144xbf16, #tpu.memory_space<vmem>>, %arg12: memref<16x1xf32, #tpu.memory_space<vmem>>, %arg13: memref<8x16xbf16, #tpu.memory_space<vmem>>, %arg14: memref<8x1xf32, #tpu.memory_space<vmem>>, %arg15: memref<1x8x128xf32, #tpu.memory_space<vmem>>, %arg16: memref<144x128xbf16, #tpu.memory_space<vmem>>) attributes {dimension_semantics = [#tpu.dimension_semantics<parallel>], iteration_bounds = array<i64: 2>, scalar_prefetch = 0 : i64, scratch_operands = 1 : i64, tpu.core_type = #tpu.core_type<tc>, window_params = [{pipeline_mode = #tpu.pipeline_mode<synchronous>, transform_indices = @transform_0, window_bounds = array<i64: 9, 128>}, {transform_indices = @transform_1, window_bounds = array<i64: 1, 8, 128>}, {pipeline_mode = #tpu.pipeline_mode<synchronous>, transform_indices = @transform_2, window_bounds = array<i64: 16, 8>}, {pipeline_mode = #tpu.pipeline_mode<synchronous>, transform_indices = @transform_3, window_bounds = array<i64: 16, 1>}, {pipeline_mode = #tpu.pipeline_mode<synchronous>, transform_indices = @transform_4, window_bounds = array<i64: 16, 144>}, {pipeline_mode = #tpu.pipeline_mode<synchronous>, transform_indices = @transform_5, window_bounds = array<i64: 16, 1>}, {pipeline_mode = #tpu.pipeline_mode<synchronous>, transform_indices = @transform_6, window_bounds = array<i64: 8, 16>}, {pipeline_mode = #tpu.pipeline_mode<synchronous>, transform_indices = @transform_7, window_bounds = array<i64: 8, 1>}, {pipeline_mode = #tpu.pipeline_mode<synchronous>, transform_indices = @transform_8, window_bounds = array<i64: 16, 8>}, {pipeline_mode = #tpu.pipeline_mode<synchronous>, transform_indices = @transform_9, window_bounds = array<i64: 16, 1>}, {pipeline_mode = #tpu.pipeline_mode<synchronous>, transform_indices = @transform_10, window_bounds = array<i64: 16, 144>}, {pipeline_mode = #tpu.pipeline_mode<synchronous>, transform_indices = @transform_11, window_bounds = array<i64: 16, 1>}, {pipeline_mode = #tpu.pipeline_mode<synchronous>, transform_indices = @transform_12, window_bounds = array<i64: 8, 16>}, {pipeline_mode = #tpu.pipeline_mode<synchronous>, transform_indices = @transform_13, window_bounds = array<i64: 8, 1>}, {transform_indices = @transform_14, window_bounds = array<i64: 1, 8, 128>}]} {
    %c0 = arith.constant 0 : index
    %c0_0 = arith.constant 0 : index
    %c0_1 = arith.constant 0 : index
    %0 = vector.load %arg2[%c0, %c0_0, %c0_1] : memref<1x8x128xf32, #tpu.memory_space<vmem>>, vector<1x8x128xf32>
    %1 = vector.shape_cast %0 : vector<1x8x128xf32> to vector<8x128xf32>
    %c0_2 = arith.constant 0 : index
    %c0_3 = arith.constant 0 : index
    %2 = vector.load %arg3[%c0_2, %c0_3] : memref<16x8xbf16, #tpu.memory_space<vmem>>, vector<16x8xbf16>
    %3 = arith.truncf %1 : vector<8x128xf32> to vector<8x128xbf16>
    %cst = arith.constant dense<0.000000e+00> : vector<16x128xf32>
    %4 = tpu.matmul %2, %3, %cst {dimension_numbers = #tpu.dot_dimension_numbers<[1], [0], [0], [1], [0, 0, 1, 1], [], []>} : vector<16x8xbf16>, vector<8x128xbf16>, vector<16x128xf32> -> vector<16x128xf32>
    %c0_4 = arith.constant 0 : index
    %c0_5 = arith.constant 0 : index
    %5 = vector.load %arg4[%c0_4, %c0_5] : memref<16x1xf32, #tpu.memory_space<vmem>>, vector<16x1xf32>
    %6 = vector.broadcast %5 : vector<16x1xf32> to vector<16x128xf32>
    %7 = arith.addf %4, %6 : vector<16x128xf32>
    %cst_6 = arith.constant 0.000000e+00 : f32
    %8 = vector.broadcast %cst_6 : f32 to vector<16x128xf32>
    %9 = arith.maximumf %7, %8 : vector<16x128xf32>
    %c17_i32 = arith.constant 17 : i32
    %10 = tpu.dynamic_rotate %9 by %c17_i32 dim 1 : vector<16x128xf32>, i32 -> vector<16x128xf32>
    %c0_7 = arith.constant 0 : index
    %c0_8 = arith.constant 0 : index
    %11 = vector.load %arg1[%c0_7, %c0_8] : memref<9x128xf32, #tpu.memory_space<vmem>>, vector<1x128xf32>
    %12 = vector.broadcast %11 : vector<1x128xf32> to vector<16x128xf32>
    %13 = arith.mulf %10, %12 : vector<16x128xf32>
    %14 = arith.truncf %13 : vector<16x128xf32> to vector<16x128xbf16>
    %c0_9 = arith.constant 0 : index
    %c0_10 = arith.constant 0 : index
    %15 = vector.load %arg16[%c0_9, %c0_10] : memref<144x128xbf16, #tpu.memory_space<vmem>>, vector<16x128xbf16>
    tpu.vector_store %arg16[%c0_9, %c0_10], %14 {strides = array<i32>} : memref<144x128xbf16, #tpu.memory_space<vmem>>, vector<16x128xbf16>,
    %c16_i32 = arith.constant 16 : i32
    %16 = tpu.dynamic_rotate %9 by %c16_i32 dim 1 : vector<16x128xf32>, i32 -> vector<16x128xf32>
    %c1 = arith.constant 1 : index
    %c0_11 = arith.constant 0 : index
    %17 = vector.load %arg1[%c1, %c0_11] : memref<9x128xf32, #tpu.memory_space<vmem>>, vector<1x128xf32>
    %18 = vector.broadcast %17 : vector<1x128xf32> to vector<16x128xf32>
    %19 = arith.mulf %16, %18 : vector<16x128xf32>
    %20 = arith.truncf %19 : vector<16x128xf32> to vector<16x128xbf16>
    %c16 = arith.constant 16 : index
    %c0_12 = arith.constant 0 : index
    %21 = vector.load %arg16[%c16, %c0_12] : memref<144x128xbf16, #tpu.memory_space<vmem>>, vector<16x128xbf16>
    tpu.vector_store %arg16[%c16, %c0_12], %20 {strides = array<i32>} : memref<144x128xbf16, #tpu.memory_space<vmem>>, vector<16x128xbf16>,
    %c15_i32 = arith.constant 15 : i32
    %22 = tpu.dynamic_rotate %9 by %c15_i32 dim 1 : vector<16x128xf32>, i32 -> vector<16x128xf32>
    %c2 = arith.constant 2 : index
    %c0_13 = arith.constant 0 : index
    %23 = vector.load %arg1[%c2, %c0_13] : memref<9x128xf32, #tpu.memory_space<vmem>>, vector<1x128xf32>
    %24 = vector.broadcast %23 : vector<1x128xf32> to vector<16x128xf32>
    %25 = arith.mulf %22, %24 : vector<16x128xf32>
    %26 = arith.truncf %25 : vector<16x128xf32> to vector<16x128xbf16>
    %c32 = arith.constant 32 : index
    %c0_14 = arith.constant 0 : index
    %27 = vector.load %arg16[%c32, %c0_14] : memref<144x128xbf16, #tpu.memory_space<vmem>>, vector<16x128xbf16>
    tpu.vector_store %arg16[%c32, %c0_14], %26 {strides = array<i32>} : memref<144x128xbf16, #tpu.memory_space<vmem>>, vector<16x128xbf16>,
    %c1_i32 = arith.constant 1 : i32
    %28 = tpu.dynamic_rotate %9 by %c1_i32 dim 1 : vector<16x128xf32>, i32 -> vector<16x128xf32>
    %c3 = arith.constant 3 : index
    %c0_15 = arith.constant 0 : index
    %29 = vector.load %arg1[%c3, %c0_15] : memref<9x128xf32, #tpu.memory_space<vmem>>, vector<1x128xf32>
    %30 = vector.broadcast %29 : vector<1x128xf32> to vector<16x128xf32>
    %31 = arith.mulf %28, %30 : vector<16x128xf32>
    %32 = arith.truncf %31 : vector<16x128xf32> to vector<16x128xbf16>
    %c48 = arith.constant 48 : index
    %c0_16 = arith.constant 0 : index
    %33 = vector.load %arg16[%c48, %c0_16] : memref<144x128xbf16, #tpu.memory_space<vmem>>, vector<16x128xbf16>
    tpu.vector_store %arg16[%c48, %c0_16], %32 {strides = array<i32>} : memref<144x128xbf16, #tpu.memory_space<vmem>>, vector<16x128xbf16>,
    %c4 = arith.constant 4 : index
    %c0_17 = arith.constant 0 : index
    %34 = vector.load %arg1[%c4, %c0_17] : memref<9x128xf32, #tpu.memory_space<vmem>>, vector<1x128xf32>
    %35 = vector.broadcast %34 : vector<1x128xf32> to vector<16x128xf32>
    %36 = arith.mulf %9, %35 : vector<16x128xf32>
    %37 = arith.truncf %36 : vector<16x128xf32> to vector<16x128xbf16>
    %c64 = arith.constant 64 : index
    %c0_18 = arith.constant 0 : index
    %38 = vector.load %arg16[%c64, %c0_18] : memref<144x128xbf16, #tpu.memory_space<vmem>>, vector<16x128xbf16>
    tpu.vector_store %arg16[%c64, %c0_18], %37 {strides = array<i32>} : memref<144x128xbf16, #tpu.memory_space<vmem>>, vector<16x128xbf16>,
    %c127_i32 = arith.constant 127 : i32
    %39 = tpu.dynamic_rotate %9 by %c127_i32 dim 1 : vector<16x128xf32>, i32 -> vector<16x128xf32>
    %c5 = arith.constant 5 : index
    %c0_19 = arith.constant 0 : index
    %40 = vector.load %arg1[%c5, %c0_19] : memref<9x128xf32, #tpu.memory_space<vmem>>, vector<1x128xf32>
    %41 = vector.broadcast %40 : vector<1x128xf32> to vector<16x128xf32>
    %42 = arith.mulf %39, %41 : vector<16x128xf32>
    %43 = arith.truncf %42 : vector<16x128xf32> to vector<16x128xbf16>
    %c80 = arith.constant 80 : index
    %c0_20 = arith.constant 0 : index
    %44 = vector.load %arg16[%c80, %c0_20] : memref<144x128xbf16, #tpu.memory_space<vmem>>, vector<16x128xbf16>
    tpu.vector_store %arg16[%c80, %c0_20], %43 {strides = array<i32>} : memref<144x128xbf16, #tpu.memory_space<vmem>>, vector<16x128xbf16>,
    %c113_i32 = arith.constant 113 : i32
    %45 = tpu.dynamic_rotate %9 by %c113_i32 dim 1 : vector<16x128xf32>, i32 -> vector<16x128xf32>
    %c6 = arith.constant 6 : index
    %c0_21 = arith.constant 0 : index
    %46 = vector.load %arg1[%c6, %c0_21] : memref<9x128xf32, #tpu.memory_space<vmem>>, vector<1x128xf32>
    %47 = vector.broadcast %46 : vector<1x128xf32> to vector<16x128xf32>
    %48 = arith.mulf %45, %47 : vector<16x128xf32>
    %49 = arith.truncf %48 : vector<16x128xf32> to vector<16x128xbf16>
    %c96 = arith.constant 96 : index
    %c0_22 = arith.constant 0 : index
    %50 = vector.load %arg16[%c96, %c0_22] : memref<144x128xbf16, #tpu.memory_space<vmem>>, vector<16x128xbf16>
    tpu.vector_store %arg16[%c96, %c0_22], %49 {strides = array<i32>} : memref<144x128xbf16, #tpu.memory_space<vmem>>, vector<16x128xbf16>,
    %c112_i32 = arith.constant 112 : i32
    %51 = tpu.dynamic_rotate %9 by %c112_i32 dim 1 : vector<16x128xf32>, i32 -> vector<16x128xf32>
    %c7 = arith.constant 7 : index
    %c0_23 = arith.constant 0 : index
    %52 = vector.load %arg1[%c7, %c0_23] : memref<9x128xf32, #tpu.memory_space<vmem>>, vector<1x128xf32>
    %53 = vector.broadcast %52 : vector<1x128xf32> to vector<16x128xf32>
    %54 = arith.mulf %51, %53 : vector<16x128xf32>
    %55 = arith.truncf %54 : vector<16x128xf32> to vector<16x128xbf16>
    %c112 = arith.constant 112 : index
    %c0_24 = arith.constant 0 : index
    %56 = vector.load %arg16[%c112, %c0_24] : memref<144x128xbf16, #tpu.memory_space<vmem>>, vector<16x128xbf16>
    tpu.vector_store %arg16[%c112, %c0_24], %55 {strides = array<i32>} : memref<144x128xbf16, #tpu.memory_space<vmem>>, vector<16x128xbf16>,
    %c111_i32 = arith.constant 111 : i32
    %57 = tpu.dynamic_rotate %9 by %c111_i32 dim 1 : vector<16x128xf32>, i32 -> vector<16x128xf32>
    %c8 = arith.constant 8 : index
    %c0_25 = arith.constant 0 : index
    %58 = vector.load %arg1[%c8, %c0_25] : memref<9x128xf32, #tpu.memory_space<vmem>>, vector<1x128xf32>
    %59 = vector.broadcast %58 : vector<1x128xf32> to vector<16x128xf32>
    %60 = arith.mulf %57, %59 : vector<16x128xf32>
    %61 = arith.truncf %60 : vector<16x128xf32> to vector<16x128xbf16>
    %c128 = arith.constant 128 : index
    %c0_26 = arith.constant 0 : index
    %62 = vector.load %arg16[%c128, %c0_26] : memref<144x128xbf16, #tpu.memory_space<vmem>>, vector<16x128xbf16>
    tpu.vector_store %arg16[%c128, %c0_26], %61 {strides = array<i32>} : memref<144x128xbf16, #tpu.memory_space<vmem>>, vector<16x128xbf16>,
    %c0_27 = arith.constant 0 : index
    %c0_28 = arith.constant 0 : index
    %63 = vector.load %arg5[%c0_27, %c0_28] : memref<16x144xbf16, #tpu.memory_space<vmem>>, vector<16x144xbf16>
    %c0_29 = arith.constant 0 : index
    %c0_30 = arith.constant 0 : index
    %64 = vector.load %arg16[%c0_29, %c0_30] : memref<144x128xbf16, #tpu.memory_space<vmem>>, vector<144x128xbf16>
    %cst_31 = arith.constant dense<0.000000e+00> : vector<16x128xf32>
    %65 = tpu.matmul %63, %64, %cst_31 {dimension_numbers = #tpu.dot_dimension_numbers<[1], [0], [0], [1], [0, 0, 1, 1], [], []>} : vector<16x144xbf16>, vector<144x128xbf16>, vector<16x128xf32> -> vector<16x128xf32>
    %c0_32 = arith.constant 0 : index
    %c0_33 = arith.constant 0 : index
    %66 = vector.load %arg6[%c0_32, %c0_33] : memref<16x1xf32, #tpu.memory_space<vmem>>, vector<16x1xf32>
    %67 = vector.broadcast %66 : vector<16x1xf32> to vector<16x128xf32>
    %68 = arith.addf %65, %67 : vector<16x128xf32>
    %cst_34 = arith.constant 0.000000e+00 : f32
    %69 = vector.broadcast %cst_34 : f32 to vector<16x128xf32>
    %70 = arith.maximumf %68, %69 : vector<16x128xf32>
    %c0_35 = arith.constant 0 : index
    %c0_36 = arith.constant 0 : index
    %71 = vector.load %arg7[%c0_35, %c0_36] : memref<8x16xbf16, #tpu.memory_space<vmem>>, vector<8x16xbf16>
    %72 = arith.truncf %70 : vector<16x128xf32> to vector<16x128xbf16>
    %cst_37 = arith.constant dense<0.000000e+00> : vector<8x128xf32>
    %73 = tpu.matmul %71, %72, %cst_37 {dimension_numbers = #tpu.dot_dimension_numbers<[1], [0], [0], [1], [0, 0, 1, 1], [], []>} : vector<8x16xbf16>, vector<16x128xbf16>, vector<8x128xf32> -> vector<8x128xf32>
    %c0_38 = arith.constant 0 : index
    %c0_39 = arith.constant 0 : index
    %74 = vector.load %arg8[%c0_38, %c0_39] : memref<8x1xf32, #tpu.memory_space<vmem>>, vector<8x1xf32>
    %75 = vector.broadcast %74 : vector<8x1xf32> to vector<8x128xf32>
    %76 = arith.addf %73, %75 : vector<8x128xf32>
    %cst_40 = arith.constant 0.000000e+00 : f32
    %77 = vector.broadcast %cst_40 : f32 to vector<8x128xf32>
    %78 = arith.maximumf %76, %77 : vector<8x128xf32>
    %c0_41 = arith.constant 0 : index
    %c0_42 = arith.constant 0 : index
    %79 = vector.load %arg9[%c0_41, %c0_42] : memref<16x8xbf16, #tpu.memory_space<vmem>>, vector<16x8xbf16>
    %80 = arith.truncf %78 : vector<8x128xf32> to vector<8x128xbf16>
    %cst_43 = arith.constant dense<0.000000e+00> : vector<16x128xf32>
    %81 = tpu.matmul %79, %80, %cst_43 {dimension_numbers = #tpu.dot_dimension_numbers<[1], [0], [0], [1], [0, 0, 1, 1], [], []>} : vector<16x8xbf16>, vector<8x128xbf16>, vector<16x128xf32> -> vector<16x128xf32>
    %c0_44 = arith.constant 0 : index
    %c0_45 = arith.constant 0 : index
    %82 = vector.load %arg10[%c0_44, %c0_45] : memref<16x1xf32, #tpu.memory_space<vmem>>, vector<16x1xf32>
    %83 = vector.broadcast %82 : vector<16x1xf32> to vector<16x128xf32>
    %84 = arith.addf %81, %83 : vector<16x128xf32>
    %cst_46 = arith.constant 0.000000e+00 : f32
    %85 = vector.broadcast %cst_46 : f32 to vector<16x128xf32>
    %86 = arith.maximumf %84, %85 : vector<16x128xf32>
    %c17_i32_47 = arith.constant 17 : i32
    %87 = tpu.dynamic_rotate %86 by %c17_i32_47 dim 1 : vector<16x128xf32>, i32 -> vector<16x128xf32>
    %c0_48 = arith.constant 0 : index
    %c0_49 = arith.constant 0 : index
    %88 = vector.load %arg1[%c0_48, %c0_49] : memref<9x128xf32, #tpu.memory_space<vmem>>, vector<1x128xf32>
    %89 = vector.broadcast %88 : vector<1x128xf32> to vector<16x128xf32>
    %90 = arith.mulf %87, %89 : vector<16x128xf32>
    %91 = arith.truncf %90 : vector<16x128xf32> to vector<16x128xbf16>
    %c0_50 = arith.constant 0 : index
    %c0_51 = arith.constant 0 : index
    %92 = vector.load %arg16[%c0_50, %c0_51] : memref<144x128xbf16, #tpu.memory_space<vmem>>, vector<16x128xbf16>
    tpu.vector_store %arg16[%c0_50, %c0_51], %91 {strides = array<i32>} : memref<144x128xbf16, #tpu.memory_space<vmem>>, vector<16x128xbf16>,
    %c16_i32_52 = arith.constant 16 : i32
    %93 = tpu.dynamic_rotate %86 by %c16_i32_52 dim 1 : vector<16x128xf32>, i32 -> vector<16x128xf32>
    %c1_53 = arith.constant 1 : index
    %c0_54 = arith.constant 0 : index
    %94 = vector.load %arg1[%c1_53, %c0_54] : memref<9x128xf32, #tpu.memory_space<vmem>>, vector<1x128xf32>
    %95 = vector.broadcast %94 : vector<1x128xf32> to vector<16x128xf32>
    %96 = arith.mulf %93, %95 : vector<16x128xf32>
    %97 = arith.truncf %96 : vector<16x128xf32> to vector<16x128xbf16>
    %c16_55 = arith.constant 16 : index
    %c0_56 = arith.constant 0 : index
    %98 = vector.load %arg16[%c16_55, %c0_56] : memref<144x128xbf16, #tpu.memory_space<vmem>>, vector<16x128xbf16>
    tpu.vector_store %arg16[%c16_55, %c0_56], %97 {strides = array<i32>} : memref<144x128xbf16, #tpu.memory_space<vmem>>, vector<16x128xbf16>,
    %c15_i32_57 = arith.constant 15 : i32
    %99 = tpu.dynamic_rotate %86 by %c15_i32_57 dim 1 : vector<16x128xf32>, i32 -> vector<16x128xf32>
    %c2_58 = arith.constant 2 : index
    %c0_59 = arith.constant 0 : index
    %100 = vector.load %arg1[%c2_58, %c0_59] : memref<9x128xf32, #tpu.memory_space<vmem>>, vector<1x128xf32>
    %101 = vector.broadcast %100 : vector<1x128xf32> to vector<16x128xf32>
    %102 = arith.mulf %99, %101 : vector<16x128xf32>
    %103 = arith.truncf %102 : vector<16x128xf32> to vector<16x128xbf16>
    %c32_60 = arith.constant 32 : index
    %c0_61 = arith.constant 0 : index
    %104 = vector.load %arg16[%c32_60, %c0_61] : memref<144x128xbf16, #tpu.memory_space<vmem>>, vector<16x128xbf16>
    tpu.vector_store %arg16[%c32_60, %c0_61], %103 {strides = array<i32>} : memref<144x128xbf16, #tpu.memory_space<vmem>>, vector<16x128xbf16>,
    %c1_i32_62 = arith.constant 1 : i32
    %105 = tpu.dynamic_rotate %86 by %c1_i32_62 dim 1 : vector<16x128xf32>, i32 -> vector<16x128xf32>
    %c3_63 = arith.constant 3 : index
    %c0_64 = arith.constant 0 : index
    %106 = vector.load %arg1[%c3_63, %c0_64] : memref<9x128xf32, #tpu.memory_space<vmem>>, vector<1x128xf32>
    %107 = vector.broadcast %106 : vector<1x128xf32> to vector<16x128xf32>
    %108 = arith.mulf %105, %107 : vector<16x128xf32>
    %109 = arith.truncf %108 : vector<16x128xf32> to vector<16x128xbf16>
    %c48_65 = arith.constant 48 : index
    %c0_66 = arith.constant 0 : index
    %110 = vector.load %arg16[%c48_65, %c0_66] : memref<144x128xbf16, #tpu.memory_space<vmem>>, vector<16x128xbf16>
    tpu.vector_store %arg16[%c48_65, %c0_66], %109 {strides = array<i32>} : memref<144x128xbf16, #tpu.memory_space<vmem>>, vector<16x128xbf16>,
    %c4_67 = arith.constant 4 : index
    %c0_68 = arith.constant 0 : index
    %111 = vector.load %arg1[%c4_67, %c0_68] : memref<9x128xf32, #tpu.memory_space<vmem>>, vector<1x128xf32>
    %112 = vector.broadcast %111 : vector<1x128xf32> to vector<16x128xf32>
    %113 = arith.mulf %86, %112 : vector<16x128xf32>
    %114 = arith.truncf %113 : vector<16x128xf32> to vector<16x128xbf16>
    %c64_69 = arith.constant 64 : index
    %c0_70 = arith.constant 0 : index
    %115 = vector.load %arg16[%c64_69, %c0_70] : memref<144x128xbf16, #tpu.memory_space<vmem>>, vector<16x128xbf16>
    tpu.vector_store %arg16[%c64_69, %c0_70], %114 {strides = array<i32>} : memref<144x128xbf16, #tpu.memory_space<vmem>>, vector<16x128xbf16>,
    %c127_i32_71 = arith.constant 127 : i32
    %116 = tpu.dynamic_rotate %86 by %c127_i32_71 dim 1 : vector<16x128xf32>, i32 -> vector<16x128xf32>
    %c5_72 = arith.constant 5 : index
    %c0_73 = arith.constant 0 : index
    %117 = vector.load %arg1[%c5_72, %c0_73] : memref<9x128xf32, #tpu.memory_space<vmem>>, vector<1x128xf32>
    %118 = vector.broadcast %117 : vector<1x128xf32> to vector<16x128xf32>
    %119 = arith.mulf %116, %118 : vector<16x128xf32>
    %120 = arith.truncf %119 : vector<16x128xf32> to vector<16x128xbf16>
    %c80_74 = arith.constant 80 : index
    %c0_75 = arith.constant 0 : index
    %121 = vector.load %arg16[%c80_74, %c0_75] : memref<144x128xbf16, #tpu.memory_space<vmem>>, vector<16x128xbf16>
    tpu.vector_store %arg16[%c80_74, %c0_75], %120 {strides = array<i32>} : memref<144x128xbf16, #tpu.memory_space<vmem>>, vector<16x128xbf16>,
    %c113_i32_76 = arith.constant 113 : i32
    %122 = tpu.dynamic_rotate %86 by %c113_i32_76 dim 1 : vector<16x128xf32>, i32 -> vector<16x128xf32>
    %c6_77 = arith.constant 6 : index
    %c0_78 = arith.constant 0 : index
    %123 = vector.load %arg1[%c6_77, %c0_78] : memref<9x128xf32, #tpu.memory_space<vmem>>, vector<1x128xf32>
    %124 = vector.broadcast %123 : vector<1x128xf32> to vector<16x128xf32>
    %125 = arith.mulf %122, %124 : vector<16x128xf32>
    %126 = arith.truncf %125 : vector<16x128xf32> to vector<16x128xbf16>
    %c96_79 = arith.constant 96 : index
    %c0_80 = arith.constant 0 : index
    %127 = vector.load %arg16[%c96_79, %c0_80] : memref<144x128xbf16, #tpu.memory_space<vmem>>, vector<16x128xbf16>
    tpu.vector_store %arg16[%c96_79, %c0_80], %126 {strides = array<i32>} : memref<144x128xbf16, #tpu.memory_space<vmem>>, vector<16x128xbf16>,
    %c112_i32_81 = arith.constant 112 : i32
    %128 = tpu.dynamic_rotate %86 by %c112_i32_81 dim 1 : vector<16x128xf32>, i32 -> vector<16x128xf32>
    %c7_82 = arith.constant 7 : index
    %c0_83 = arith.constant 0 : index
    %129 = vector.load %arg1[%c7_82, %c0_83] : memref<9x128xf32, #tpu.memory_space<vmem>>, vector<1x128xf32>
    %130 = vector.broadcast %129 : vector<1x128xf32> to vector<16x128xf32>
    %131 = arith.mulf %128, %130 : vector<16x128xf32>
    %132 = arith.truncf %131 : vector<16x128xf32> to vector<16x128xbf16>
    %c112_84 = arith.constant 112 : index
    %c0_85 = arith.constant 0 : index
    %133 = vector.load %arg16[%c112_84, %c0_85] : memref<144x128xbf16, #tpu.memory_space<vmem>>, vector<16x128xbf16>
    tpu.vector_store %arg16[%c112_84, %c0_85], %132 {strides = array<i32>} : memref<144x128xbf16, #tpu.memory_space<vmem>>, vector<16x128xbf16>,
    %c111_i32_86 = arith.constant 111 : i32
    %134 = tpu.dynamic_rotate %86 by %c111_i32_86 dim 1 : vector<16x128xf32>, i32 -> vector<16x128xf32>
    %c8_87 = arith.constant 8 : index
    %c0_88 = arith.constant 0 : index
    %135 = vector.load %arg1[%c8_87, %c0_88] : memref<9x128xf32, #tpu.memory_space<vmem>>, vector<1x128xf32>
    %136 = vector.broadcast %135 : vector<1x128xf32> to vector<16x128xf32>
    %137 = arith.mulf %134, %136 : vector<16x128xf32>
    %138 = arith.truncf %137 : vector<16x128xf32> to vector<16x128xbf16>
    %c128_89 = arith.constant 128 : index
    %c0_90 = arith.constant 0 : index
    %139 = vector.load %arg16[%c128_89, %c0_90] : memref<144x128xbf16, #tpu.memory_space<vmem>>, vector<16x128xbf16>
    tpu.vector_store %arg16[%c128_89, %c0_90], %138 {strides = array<i32>} : memref<144x128xbf16, #tpu.memory_space<vmem>>, vector<16x128xbf16>,
    %c0_91 = arith.constant 0 : index
    %c0_92 = arith.constant 0 : index
    %140 = vector.load %arg11[%c0_91, %c0_92] : memref<16x144xbf16, #tpu.memory_space<vmem>>, vector<16x144xbf16>
    %c0_93 = arith.constant 0 : index
    %c0_94 = arith.constant 0 : index
    %141 = vector.load %arg16[%c0_93, %c0_94] : memref<144x128xbf16, #tpu.memory_space<vmem>>, vector<144x128xbf16>
    %cst_95 = arith.constant dense<0.000000e+00> : vector<16x128xf32>
    %142 = tpu.matmul %140, %141, %cst_95 {dimension_numbers = #tpu.dot_dimension_numbers<[1], [0], [0], [1], [0, 0, 1, 1], [], []>} : vector<16x144xbf16>, vector<144x128xbf16>, vector<16x128xf32> -> vector<16x128xf32>
    %c0_96 = arith.constant 0 : index
    %c0_97 = arith.constant 0 : index
    %143 = vector.load %arg12[%c0_96, %c0_97] : memref<16x1xf32, #tpu.memory_space<vmem>>, vector<16x1xf32>
    %144 = vector.broadcast %143 : vector<16x1xf32> to vector<16x128xf32>
    %145 = arith.addf %142, %144 : vector<16x128xf32>
    %cst_98 = arith.constant 0.000000e+00 : f32
    %146 = vector.broadcast %cst_98 : f32 to vector<16x128xf32>
    %147 = arith.maximumf %145, %146 : vector<16x128xf32>
    %c0_99 = arith.constant 0 : index
    %c0_100 = arith.constant 0 : index
    %148 = vector.load %arg13[%c0_99, %c0_100] : memref<8x16xbf16, #tpu.memory_space<vmem>>, vector<8x16xbf16>
    %149 = arith.truncf %147 : vector<16x128xf32> to vector<16x128xbf16>
    %cst_101 = arith.constant dense<0.000000e+00> : vector<8x128xf32>
    %150 = tpu.matmul %148, %149, %cst_101 {dimension_numbers = #tpu.dot_dimension_numbers<[1], [0], [0], [1], [0, 0, 1, 1], [], []>} : vector<8x16xbf16>, vector<16x128xbf16>, vector<8x128xf32> -> vector<8x128xf32>
    %c0_102 = arith.constant 0 : index
    %c0_103 = arith.constant 0 : index
    %151 = vector.load %arg14[%c0_102, %c0_103] : memref<8x1xf32, #tpu.memory_space<vmem>>, vector<8x1xf32>
    %152 = vector.broadcast %151 : vector<8x1xf32> to vector<8x128xf32>
    %153 = arith.addf %150, %152 : vector<8x128xf32>
    %154 = arith.addf %153, %1 : vector<8x128xf32>
    %cst_104 = arith.constant 0.000000e+00 : f32
    %155 = vector.broadcast %cst_104 : f32 to vector<8x128xf32>
    %156 = arith.maximumf %154, %155 : vector<8x128xf32>
    %c0_105 = arith.constant 0 : index
    %c0_106 = arith.constant 0 : index
    %c0_107 = arith.constant 0 : index
    %157 = vector.load %arg15[%c0_105, %c0_106, %c0_107] : memref<1x8x128xf32, #tpu.memory_space<vmem>>, vector<1x8x128xf32>
    %158 = vector.shape_cast %157 : vector<1x8x128xf32> to vector<8x128xf32>
    %159 = vector.shape_cast %156 : vector<8x128xf32> to vector<1x8x128xf32>
    tpu.vector_store %arg15[%c0_105, %c0_106, %c0_107], %159 {strides = array<i32>} : memref<1x8x128xf32, #tpu.memory_space<vmem>>, vector<1x8x128xf32>,
    return
  }
  func.func @transform_0(%arg0: i32) -> (i32, i32) {
    %c0_i32 = arith.constant 0 : i32
    %c0_i32_0 = arith.constant 0 : i32
    %c0_i32_1 = arith.constant 0 : i32
    return %c0_i32, %c0_i32_0 : i32, i32
  }
  func.func @transform_1(%arg0: i32) -> (i32, i32, i32) {
    %c0_i32 = arith.constant 0 : i32
    %c0_i32_0 = arith.constant 0 : i32
    %c0_i32_1 = arith.constant 0 : i32
    return %arg0, %c0_i32, %c0_i32_0 : i32, i32, i32
  }
  func.func @transform_2(%arg0: i32) -> (i32, i32) {
    %c0_i32 = arith.constant 0 : i32
    %c0_i32_0 = arith.constant 0 : i32
    %c0_i32_1 = arith.constant 0 : i32
    return %c0_i32, %c0_i32_0 : i32, i32
  }
  func.func @transform_3(%arg0: i32) -> (i32, i32) {
    %c0_i32 = arith.constant 0 : i32
    %c0_i32_0 = arith.constant 0 : i32
    %c0_i32_1 = arith.constant 0 : i32
    return %c0_i32, %c0_i32_0 : i32, i32
  }
  func.func @transform_4(%arg0: i32) -> (i32, i32) {
    %c0_i32 = arith.constant 0 : i32
    %c0_i32_0 = arith.constant 0 : i32
    %c0_i32_1 = arith.constant 0 : i32
    return %c0_i32, %c0_i32_0 : i32, i32
  }
  func.func @transform_5(%arg0: i32) -> (i32, i32) {
    %c0_i32 = arith.constant 0 : i32
    %c0_i32_0 = arith.constant 0 : i32
    %c0_i32_1 = arith.constant 0 : i32
    return %c0_i32, %c0_i32_0 : i32, i32
  }
  func.func @transform_6(%arg0: i32) -> (i32, i32) {
    %c0_i32 = arith.constant 0 : i32
    %c0_i32_0 = arith.constant 0 : i32
    %c0_i32_1 = arith.constant 0 : i32
    return %c0_i32, %c0_i32_0 : i32, i32
  }
  func.func @transform_7(%arg0: i32) -> (i32, i32) {
    %c0_i32 = arith.constant 0 : i32
    %c0_i32_0 = arith.constant 0 : i32
    %c0_i32_1 = arith.constant 0 : i32
    return %c0_i32, %c0_i32_0 : i32, i32
  }
  func.func @transform_8(%arg0: i32) -> (i32, i32) {
    %c0_i32 = arith.constant 0 : i32
    %c0_i32_0 = arith.constant 0 : i32
    %c0_i32_1 = arith.constant 0 : i32
    return %c0_i32, %c0_i32_0 : i32, i32
  }
  func.func @transform_9(%arg0: i32) -> (i32, i32) {
    %c0_i32 = arith.constant 0 : i32
    %c0_i32_0 = arith.constant 0 : i32
    %c0_i32_1 = arith.constant 0 : i32
    return %c0_i32, %c0_i32_0 : i32, i32
  }
  func.func @transform_10(%arg0: i32) -> (i32, i32) {
    %c0_i32 = arith.constant 0 : i32
    %c0_i32_0 = arith.constant 0 : i32
    %c0_i32_1 = arith.constant 0 : i32
    return %c0_i32, %c0_i32_0 : i32, i32
  }
  func.func @transform_11(%arg0: i32) -> (i32, i32) {
    %c0_i32 = arith.constant 0 : i32
    %c0_i32_0 = arith.constant 0 : i32
    %c0_i32_1 = arith.constant 0 : i32
    return %c0_i32, %c0_i32_0 : i32, i32
  }
  func.func @transform_12(%arg0: i32) -> (i32, i32) {
    %c0_i32 = arith.constant 0 : i32
    %c0_i32_0 = arith.constant 0 : i32
    %c0_i32_1 = arith.constant 0 : i32
    return %c0_i32, %c0_i32_0 : i32, i32
  }
  func.func @transform_13(%arg0: i32) -> (i32, i32) {
    %c0_i32 = arith.constant 0 : i32
    %c0_i32_0 = arith.constant 0 : i32
    %c0_i32_1 = arith.constant 0 : i32
    return %c0_i32, %c0_i32_0 : i32, i32
  }
  func.func @transform_14(%arg0: i32) -> (i32, i32, i32) {
    %c0_i32 = arith.constant 0 : i32
    %c0_i32_0 = arith.constant 0 : i32
    %c0_i32_1 = arith.constant 0 : i32
    return %arg0, %c0_i32, %c0_i32_0 : i32, i32, i32
  }
}

</mosaic_0001>

<bundles_post_ra>
// kernel: block_forward.1
= control target key start
LH: loop header
LB: loop body
LE: loop exit
PB: predicated region body
PF: predicated region fallthrough
CT: control target
= control target key end

     0   :  { %s1341_s29 = smov 0   ;;  %s1586_s0 = inlined_call_operand.vmem [shape: f32[9,128], index: 0, kind: input, shape index: {}]   ;;  %s1587_s1 = inlined_call_operand.vmem [shape: f32[2,8,128], index: 1, kind: input, shape index: {}]   ;;  %s1588_s2 = inlined_call_operand.vmem [shape: bf16[16,8], index: 2, kind: input, shape index: {}]   ;;  %s1589_s3 = inlined_call_operand.vmem [shape: f32[16,1], index: 3, kind: input, shape index: {}]   ;;  %s1590_s4 = inlined_call_operand.vmem [shape: bf16[16,144], index: 4, kind: input, shape index: {}]   ;;  %s1591_s5 = inlined_call_operand.vmem [shape: f32[16,1], index: 5, kind: input, shape index: {}]   ;;  %s1592_s6 = inlined_call_operand.vmem [shape: bf16[8,16], index: 6, kind: input, shape index: {}]   ;;  %s1593_s7 = inlined_call_operand.vmem [shape: f32[8,1], index: 7, kind: input, shape index: {}]   ;;  %s1594_s8 = inlined_call_operand.vmem [shape: bf16[16,8], index: 8, kind: input, shape index: {}]   ;;  %s1595_s9 = inlined_call_operand.vmem [shape: f32[16,1], index: 9, kind: input, shape index: {}]   ;;  %s1596_s10 = inlined_call_operand.vmem [shape: bf16[16,144], index: 10, kind: input, shape index: {}]   ;;  %s1597_s11 = inlined_call_operand.vmem [shape: f32[16,1], index: 11, kind: input, shape index: {}]   ;;  %s1598_s12 = inlined_call_operand.vmem [shape: bf16[8,16], index: 12, kind: input, shape index: {}]   ;;  %s1599_s13 = inlined_call_operand.vmem [shape: f32[8,1], index: 13, kind: input, shape index: {}]   ;;  %s1600_s14 = inlined_call_operand.vmem [shape: f32[2,8,128], index: 14, kind: output, shape index: {}]  }
   0x1 LB: > { %s1147_s30 = sadd.s32 4294967295, %s1253_s29   ;;  %p1151_p0 = scmp.ge.s32.totalorder %s1253_s29, 1  ;;  %s1253_s29 = sphi %s1341_s29, %s24_s29  }
   0x2   : > { %p411_p1 = scmp.lt.s32.totalorder %s1253_s29, 3 }
   0x4   : > { %p412_p2 = pnand %p1151_p0, %p411_p1 }
   0x5   : > { %p455_p3 = scmp.lt.s32.totalorder (!%p412_p2), %s1147_s30, 1  ;;  %v1255_v0 = vmov (!%p412_p2), 0.0   ;;  %vm1256_vm0 = vmmov (!%p412_p2), 0   ;;  %v468_v1 = vld [vmem:[%s1589_s3] sm:$0xff] (!%p412_p2)  ;;  %v1257_v2 = vmov (!%p412_p2), 0   ;;  %v469_v3 = vld [vmem:[%s1589_s3 + $0x8] sm:$0xff] (!%p412_p2) }
   0x6   : > { %415 = sbr.rel (%p412_p2) target bundleno = 1656 (0x678), region = 76  ;;  %1194 = vmatprep.subr.bf16.mxu1 (!%p412_p2), %v1255_v0  ;;  %1196 = vmatprep.mubr.msk.bf16.mxu1 (!%p412_p2), %vm1256_vm0, %v1255_v0  ;;  %vm489_vm1 = vcmask (!%p412_p2), 1043456   ;;  %v1239_v7 = vld [vmem:[%s1588_s2] sm:$0xff] (!%p412_p2)   ;;  %vm485_vm2 = vcmask (!%p412_p2), 64512   ;;  %s1258_s27 = smov (!%p412_p2), 16   ;;  %vm681_vm3 = vcmask (!%p412_p2), 130048  }
   0x7   : > { %1237 = vset.pattern.permute.xlu0 (!%p412_p2), %v1257_v2  ;;  %1238 = vset.pattern.permute.xlu1 (!%p412_p2), %v1257_v2  ;;  %v1384_v17 = vld [vmem:[%s1586_s0 + $0x4] ss:$0 sm:$0xff] (!%p412_p2)  ;;  %s1259_s28 = smov (!%p412_p2), 17   ;;  %s1260_s15 = smov (!%p412_p2), 15   ;;  %v784_v25 = vld [vmem:[%s1595_s9 + $0x8] sm:$0xff] (!%p412_p2) }
   0x8   : > { %472 = vperm.xlu0 (!%p412_p2), %1237, %v468_v1   ;;  %1200 = vmatprep.subr.bf16.mxu0 (!%p412_p2), %v1255_v0  ;;  %s1261_s16 = smov (!%p412_p2), 1   ;;  %s1262_s18 = smov (!%p412_p2), 127   ;;  %v660_v22 = vld [vmem:[%s1591_s5] sm:$0xff] (!%p412_p2)  ;;  %v661_v26 = vld [vmem:[%s1591_s5 + $0x8] sm:$0xff] (!%p412_p2) }
   0x9   : > { %1202 = vmatprep.mubr.msk.bf16.mxu0 (!%p412_p2), %vm1256_vm0, %v1255_v0  ;;  %s1602_s19 = smov (!%p412_p2), 113   ;;  %s1604_s20 = smov (!%p412_p2), 112   ;;  %v1240_v23 = vld [vmem:[%s1590_s4 + $0x4] ss:$8 sps:$4 sm:$0xff] (!%p412_p2)   ;;  %v1432_v30 = vld [vmem:[%s1586_s0] ss:$0 sm:$0xff] (!%p412_p2) }
   0xa   : > { %s1265_s21 = smov (!%p412_p2), 111   ;;  %v730_v24 = vld [vmem:[%s1593_s7] sm:$0xff] (!%p412_p2)  ;;  %s1607_s24 = smov (!%p412_p2), 112  }
   0xb   : > { %v783_v27 = vld [vmem:[%s1595_s9] sm:$0xff] (!%p412_p2) }
   0xc   : > { %477 = vperm.xlu0 (!%p412_p2), %1237, %v469_v3   ;;  %v1439_v35 = vld [vmem:[%s1586_s0 + $0x1] ss:$0 sm:$0xff] (!%p412_p2)  ;;  %v1446_v40 = vld [vmem:[%s1586_s0 + $0x2] ss:$0 sm:$0xff] (!%p412_p2)  ;;  %v1454_v46 = vld [vmem:[%s1586_s0 + $0x3] ss:$0 sm:$0xff] (!%p412_p2) }
   0xd   : > { %s1610_s30 = smov (!%p455_p3, %s1147_s30), 1  ;;  %v1463_v54 = vld [vmem:[%s1586_s0 + $0x5] ss:$0 sm:$0xff]  ;;  %v1474_v59 = vld [vmem:[%s1586_s0 + $0x6] ss:$0 sm:$0xff] }
   0xe   : > { %s1601_s17 = sshll.u32 %s1610_s30, 3  ;;  %v1482_v3 = vld [vmem:[%s1586_s0 + $0x7] ss:$0 sm:$0xff] }
   0xf   : > { %s458_s22 = scalar_lea.vmem %s1587_s1, %s1601_s17 }
  0x10   : > { %v1371_v4 = vld [vmem:[%s458_s22] sm:$0xff] }
  0x11   : > { %v467_v5 = vpack.c.bf16 %v1371_v4, %v1371_v4 }
  0x13   : > { %v491_v6 = vsel %vm489_vm1, %v467_v5, 0 }
  0x14   : > { %1195 = vmatpush3.bf16.msra.mxu1 %v491_v6 }
  0x15   : > { %685 = vmatprep.subr.bf16.mxu1 %v1257_v2 }
  0x17   : > { %1197 = vmatmul.mubr.msk.bf16.vlgmr.msra.gmra.mrb[0].mxu1 %vm485_vm2, %v1239_v7 }
  0x18   : > { %1167 = vmatprep.mubr.msk.bf16.mxu1 %vm681_vm3, %v1240_v23 }
  0x87   : > { %v473_v8 = vpop.permute.xlu0 %472 }
  0x8b   : > { %v478_v12 = vpop.permute.xlu0 %477 }
  0xea   : > { %v527_v9 = vpop.f32.mrb[0].mxu1 }
  0xeb   : > { %v528_v10 = vadd.f32 %v527_v9, %v473_v8  ;;  %v1198_v11 = vpop.f32.mrb[1].mxu1  ;;  %v1490_v9 = vld [vmem:[%s1586_s0 + $0x8] ss:$0 sm:$0xff] }
  0xec   : > { %v530_v13 = vpop.f32.mrb[2].mxu1 }
  0xed   : > { %v534_v14 = vmax.f32 %v528_v10, 0.0  ;;  %v531_v15 = vadd.f32 %v530_v13, %v478_v12  ;;  %v1199_v16 = vpop.f32.mrb[3].mxu1 }
  0xef   : > { %v535_v18 = vmax.f32 %v531_v15, 0.0  ;;  %549 = vrot.lane.b32.xlu0 %v534_v14, %s1258_s27  ;;  %536 = vrot.lane.b32.xlu1 %v534_v14, %s1259_s28  ;;  %v1389_v19 = vmul.f32 %v1384_v17, %v534_v14  ;;  %v1242_v15 = vld [vmem:[%s1590_s4] ss:$8 sps:$4 sm:$0xff]  }
  0xf1   : > { %v1392_v20 = vmul.f32 %v1384_v17, %v535_v18 }
  0xf3   : > { %562 = vrot.lane.b32.xlu0 %v534_v14, %s1260_s15  ;;  %538 = vrot.lane.b32.xlu1 %v535_v18, %s1259_s28  ;;  %v595_v21 = vpack.c.bf16 %v1392_v20, %v1389_v19 }
  0xf7   : > { %575 = vrot.lane.b32.xlu0 %v534_v14, %s1261_s16  ;;  %551 = vrot.lane.b32.xlu1 %v535_v18, %s1258_s27 }
  0xfb   : > { %597 = vrot.lane.b32.xlu0 %v534_v14, %s1262_s18  ;;  %564 = vrot.lane.b32.xlu1 %v535_v18, %s1260_s15 }
  0xff   : > { %610 = vrot.lane.b32.xlu0 %v534_v14, %s1602_s19  ;;  %577 = vrot.lane.b32.xlu1 %v535_v18, %s1261_s16 }
 0x103   : > { %623 = vrot.lane.b32.xlu0 %v534_v14, %s1604_s20  ;;  %599 = vrot.lane.b32.xlu1 %v535_v18, %s1262_s18 }
 0x107   : > { %636 = vrot.lane.b32.xlu0 %v534_v14, %s1265_s21  ;;  %612 = vrot.lane.b32.xlu1 %v535_v18, %s1602_s19 }
 0x10b   : > { %664 = vperm.xlu0 %1237, %v660_v22   ;;  %625 = vrot.lane.b32.xlu1 %v535_v18, %s1604_s20 }
 0x10f   : > { %733 = vperm.xlu0 %1237, %v730_v24   ;;  %638 = vrot.lane.b32.xlu1 %v535_v18, %s1265_s21 }
 0x113   : > { %792 = vperm.xlu0 %1237, %v784_v25   ;;  %669 = vperm.xlu1 %1238, %v661_v26  }
 0x117   : > { %787 = vperm.xlu1 %1238, %v783_v27  }
 0x161   : > { %v550_v28 = vpop.permute.xlu0 %549  ;;  %v537_v29 = vpop.permute.xlu1 %536 }
 0x162   : > { %v545_v33 = vmul.f32 %v1432_v30, %v537_v29  ;;  %v558_v38 = vmul.f32 %v1439_v35, %v550_v28  ;;  %v728_v28 = vld [vmem:[%s1592_s6] sm:$0xf] }
 0x165   : > { %v563_v31 = vpop.permute.xlu0 %562  ;;  %v539_v32 = vpop.permute.xlu1 %538 }
 0x166   : > { %v546_v34 = vmul.f32 %v1432_v30, %v539_v32  ;;  %v571_v44 = vmul.f32 %v1446_v40, %v563_v31 }
 0x168   : > { %v547_v36 = vpack.c.bf16 %v546_v34, %v545_v33 }
 0x169   : > { %v552_v37 = vpop.permute.xlu1 %551  ;;  %v576_v41 = vpop.permute.xlu0 %575 }
 0x16a   : > { %v559_v39 = vmul.f32 %v1439_v35, %v552_v37  ;;  %686 = vmatpush1.bf16.msra.mxu1 %v547_v36  ;;  %v584_v50 = vmul.f32 %v1454_v46, %v576_v41  ;;  %v1243_v41 = vld [vmem:[%s1594_s8] sm:$0xff]  }
 0x16b   : > { %687 = vmatprep.subr.bf16.mxu1 %v1257_v2 }
 0x16c   : > { %v560_v42 = vpack.c.bf16 %v559_v39, %v558_v38 }
 0x16d   : > { %v565_v43 = vpop.permute.xlu1 %564  ;;  %v598_v48 = vpop.permute.xlu0 %597 }
 0x16e   : > { %v572_v45 = vmul.f32 %v1446_v40, %v565_v43  ;;  %688 = vmatpush1.bf16.msra.mxu1 %v560_v42  ;;  %v606_v58 = vmul.f32 %v1463_v54, %v598_v48 }
 0x16f   : > { %689 = vmatprep.subr.bf16.mxu1 %v1257_v2 }
 0x170   : > { %v573_v47 = vpack.c.bf16 %v572_v45, %v571_v44 }
 0x171   : > { %v578_v49 = vpop.permute.xlu1 %577  ;;  %v611_v55 = vpop.permute.xlu0 %610 }
 0x172   : > { %v585_v51 = vmul.f32 %v1454_v46, %v578_v49  ;;  %690 = vmatpush1.bf16.msra.mxu1 %v573_v47  ;;  %v619_v1 = vmul.f32 %v1474_v59, %v611_v55 }
 0x173   : > { %691 = vmatprep.subr.bf16.mxu1 %v1257_v2 }
 0x174   : > { %v586_v52 = vpack.c.bf16 %v585_v51, %v584_v50 }
 0x175   : > { %v600_v53 = vpop.permute.xlu1 %599  ;;  %v624_v62 = vpop.permute.xlu0 %623 }
 0x176   : > { %692 = vmatpush1.bf16.msra.mxu1 %v586_v52  ;;  %v607_v56 = vmul.f32 %v1463_v54, %v600_v53  ;;  %v632_v8 = vmul.f32 %v1482_v3, %v624_v62 }
 0x177   : > { %693 = vmatprep.subr.bf16.mxu1 %v1257_v2 }
 0x178   : > { %v608_v60 = vpack.c.bf16 %v607_v56, %v606_v58  ;;  %v973_v56 = vld [vmem:[%s1597_s11] sm:$0xff] }
 0x179   : > { %v613_v57 = vpop.permute.xlu1 %612  ;;  %v637_v10 = vpop.permute.xlu0 %636  ;;  %v1042_v58 = vld [vmem:[%s1599_s13] sm:$0xff] }
 0x17a   : > { %694 = vmatpush1.bf16.msra.mxu1 %v595_v21  ;;  %v620_v61 = vmul.f32 %v1474_v59, %v613_v57  ;;  %v645_v13 = vmul.f32 %v1490_v9, %v637_v10  ;;  %v974_v57 = vld [vmem:[%s1597_s11 + $0x8] sm:$0xff] }
 0x17b   : > { %695 = vmatprep.subr.bf16.mxu1 %v1257_v2 }
 0x17c   : > { %v621_v5 = vpack.c.bf16 %v620_v61, %v619_v1 }
 0x17d   : > { %v626_v63 = vpop.permute.xlu1 %625 }
 0x17e   : > { %696 = vmatpush1.bf16.msra.mxu1 %v608_v60  ;;  %v633_v6 = vmul.f32 %v1482_v3, %v626_v63 }
 0x17f   : > { %697 = vmatprep.subr.bf16.mxu1 %v1257_v2 }
 0x180   : > { %v634_v11 = vpack.c.bf16 %v633_v6, %v632_v8 }
 0x181   : > { %v639_v7 = vpop.permute.xlu1 %638 }
 0x182   : > { %698 = vmatpush1.bf16.msra.mxu1 %v621_v5  ;;  %v646_v12 = vmul.f32 %v1490_v9, %v639_v7 }
 0x183   : > { %699 = vmatprep.subr.bf16.mxu1 %v1257_v2 }
 0x184   : > { %v647_v14 = vpack.c.bf16 %v646_v12, %v645_v13 }
 0x186   : > { %700 = vmatpush1.bf16.msra.mxu1 %v634_v11 }
 0x187   : > { %701 = vmatprep.subr.bf16.mxu1 %v1257_v2 }
 0x18a   : > { %702 = vmatpush1.bf16.msra.mxu1 %v647_v14  ;;  %v665_v16 = vpop.permute.xlu0 %664 }
 0x18b   : > { %1212 = vmatprep.subr.bf16.mxu1 %v1255_v0 }
 0x18d   : > { %718 = vmatmul.mubr.bf16.vlgmr.msra.gmra.mrb[4].mxu1 %v1242_v15 }
 0x18e   : > { %1214 = vmatprep.mubr.msk.bf16.mxu1 %vm1256_vm0, %v1255_v0  ;;  %v734_v29 = vpop.permute.xlu0 %733 }
 0x192   : > { %v670_v21 = vpop.permute.xlu1 %669  ;;  %v793_v45 = vpop.permute.xlu0 %792 }
 0x260   : > { %v719_v18 = vpop.f32.mrb[4].mxu1 }
 0x261   : > { %v720_v19 = vadd.f32 %v719_v18, %v665_v16  ;;  %v721_v20 = vpop.f32.mrb[5].mxu1 }
 0x262   : > { %v722_v22 = vpop.f32.mrb[6].mxu1 }
 0x263   : > { %v723_v23 = vadd.f32 %v722_v22, %v670_v21  ;;  %v724_v24 = vpop.f32.mrb[7].mxu1  ;;  %v726_v25 = vmax.f32 %v720_v19, 0.0 }
 0x265   : > { %v727_v26 = vmax.f32 %v723_v23, 0.0 }
 0x267   : > { %v729_v27 = vpack.c.bf16 %v727_v26, %v726_v25 }
 0x269   : > { %1201 = vmatpush3.bf16.msra.mxu0 %v729_v27 }
 0x26a   : > { %1206 = vmatprep.subr.bf16.mxu0 %v1255_v0 }
 0x26c   : > { %1203 = vmatmul.mubr.msk.bf16.vlgmr.msra.gmra.mrb[0].mxu0 %vm681_vm3, %v728_v28 }
 0x26d   : > { %1208 = vmatprep.mubr.msk.bf16.mxu0 %vm1256_vm0, %v1255_v0  ;;  %v788_v0 = vpop.permute.xlu1 %787 }
 0x33f   : > { %v773_v31 = vpop.f32.mrb[0].mxu0 }
 0x340   : > { %v774_v32 = vadd.f32 %v773_v31, %v734_v29  ;;  %v1204_v33 = vpop.f32.mrb[1].mxu0 }
 0x341   : > { %v776_v34 = vpop.f32.mrb[2].mxu0 }
 0x342   : > { %v779_v36 = vmax.f32 %v774_v32, 0.0  ;;  %v1205_v37 = vpop.f32.mrb[3].mxu0 }
 0x344   : > { %v782_v38 = vpack.c.bf16 %v779_v36, %v779_v36 }
 0x346   : > { %v804_v39 = vsel %vm489_vm1, %v782_v38, 0  ;;  %v1246_v38 = vld [vmem:[%s1596_s10] ss:$8 sps:$4 sm:$0xff]  }
 0x347   : > { %1207 = vmatpush3.bf16.msra.mxu0 %v804_v39 }
 0x348   : > { %997 = vmatprep.subr.bf16.mxu0 %v1257_v2 }
 0x34a   : > { %1209 = vmatmul.mubr.msk.bf16.vlgmr.msra.gmra.mrb[4].mxu0 %vm485_vm2, %v1243_v41 }
 0x41d   : > { %v840_v42 = vpop.f32.mrb[4].mxu0 }
 0x41e   : > { %v841_v43 = vadd.f32 %v840_v42, %v788_v0  ;;  %v1210_v44 = vpop.f32.mrb[5].mxu0 }
 0x41f   : > { %v843_v47 = vpop.f32.mrb[6].mxu0 }
 0x420   : > { %v847_v48 = vmax.f32 %v841_v43, 0.0  ;;  %v844_v49 = vadd.f32 %v843_v47, %v793_v45  ;;  %v1211_v50 = vpop.f32.mrb[7].mxu0 }
 0x422   : > { %v848_v51 = vmax.f32 %v844_v49, 0.0  ;;  %849 = vrot.lane.b32.xlu1 %v847_v48, %s1259_s28  ;;  %v906_v52 = vmul.f32 %v1384_v17, %v847_v48 }
 0x424   : > { %851 = vrot.lane.b32.xlu0 %v848_v51, %s1259_s28  ;;  %v907_v53 = vmul.f32 %v1384_v17, %v848_v51  ;;  %s1606_s28 = smov 113   ;;  %v1244_v17 = vld [vmem:[%s1596_s10 + $0x4] ss:$8 sps:$4 sm:$0xff]  }
 0x425   : > { %1182 = vmatprep.mubr.msk.bf16.mxu0 %vm681_vm3, %v1244_v17 }
 0x426   : > { %862 = vrot.lane.b32.xlu1 %v847_v48, %s1258_s27  ;;  %v908_v55 = vpack.c.bf16 %v907_v53, %v906_v52 }
 0x428   : > { %864 = vrot.lane.b32.xlu0 %v848_v51, %s1258_s27 }
 0x42a   : > { %875 = vrot.lane.b32.xlu1 %v847_v48, %s1260_s15 }
 0x42c   : > { %877 = vrot.lane.b32.xlu0 %v848_v51, %s1260_s15 }
 0x42e   : > { %888 = vrot.lane.b32.xlu1 %v847_v48, %s1261_s16 }
 0x430   : > { %890 = vrot.lane.b32.xlu0 %v848_v51, %s1261_s16 }
 0x432   : > { %910 = vrot.lane.b32.xlu1 %v847_v48, %s1262_s18 }
 0x434   : > { %912 = vrot.lane.b32.xlu0 %v848_v51, %s1262_s18 }
 0x436   : > { %923 = vrot.lane.b32.xlu1 %v847_v48, %s1606_s28 }
 0x438   : > { %925 = vrot.lane.b32.xlu0 %v848_v51, %s1606_s28  ;;  %s1608_s28 = sshll.u32 %s1610_s30, 3 }
 0x439   : > { %s462_s27 = scalar_lea.vmem %s1600_s14, %s1608_s28 }
 0x43a   : > { %936 = vrot.lane.b32.xlu1 %v847_v48, %s1607_s24 }
 0x43c   : > { %938 = vrot.lane.b32.xlu0 %v848_v51, %s1607_s24 }
 0x43e   : > { %949 = vrot.lane.b32.xlu1 %v847_v48, %s1265_s21 }
 0x440   : > { %951 = vrot.lane.b32.xlu0 %v848_v51, %s1265_s21 }
 0x442   : > { %977 = vperm.xlu1 %1238, %v973_v56  }
 0x444   : > { %982 = vperm.xlu0 %1237, %v974_v57  }
 0x446   : > { %1045 = vperm.xlu1 %1238, %v1042_v58  }
 0x494   : > { %v850_v60 = vpop.permute.xlu1 %849 }
 0x495   : > { %v858_v62 = vmul.f32 %v1432_v30, %v850_v60 }
 0x496   : > { %v852_v61 = vpop.permute.xlu0 %851 }
 0x497   : > { %v859_v63 = vmul.f32 %v1432_v30, %v852_v61 }
 0x498   : > { %v863_v1 = vpop.permute.xlu1 %862 }
 0x499   : > { %v860_v5 = vpack.c.bf16 %v859_v63, %v858_v62  ;;  %v871_v7 = vmul.f32 %v1439_v35, %v863_v1 }
 0x49a   : > { %v865_v6 = vpop.permute.xlu0 %864 }
 0x49b   : > { %v872_v8 = vmul.f32 %v1439_v35, %v865_v6  ;;  %998 = vmatpush1.bf16.msra.mxu0 %v860_v5 }
 0x49c   : > { %v876_v10 = vpop.permute.xlu1 %875  ;;  %999 = vmatprep.subr.bf16.mxu0 %v1257_v2 }
 0x49d   : > { %v873_v11 = vpack.c.bf16 %v872_v8, %v871_v7  ;;  %v884_v13 = vmul.f32 %v1446_v40, %v876_v10 }
 0x49e   : > { %v878_v12 = vpop.permute.xlu0 %877 }
 0x49f   : > { %v885_v14 = vmul.f32 %v1446_v40, %v878_v12  ;;  %1000 = vmatpush1.bf16.msra.mxu0 %v873_v11 }
 0x4a0   : > { %v889_v15 = vpop.permute.xlu1 %888  ;;  %1001 = vmatprep.subr.bf16.mxu0 %v1257_v2 }
 0x4a1   : > { %v886_v30 = vpack.c.bf16 %v885_v14, %v884_v13  ;;  %v897_v18 = vmul.f32 %v1454_v46, %v889_v15 }
 0x4a2   : > { %v891_v16 = vpop.permute.xlu0 %890 }
 0x4a3   : > { %v898_v35 = vmul.f32 %v1454_v46, %v891_v16  ;;  %1002 = vmatpush1.bf16.msra.mxu0 %v886_v30 }
 0x4a4   : > { %v911_v19 = vpop.permute.xlu1 %910  ;;  %1003 = vmatprep.subr.bf16.mxu0 %v1257_v2 }
 0x4a5   : > { %v899_v20 = vpack.c.bf16 %v898_v35, %v897_v18  ;;  %v919_v24 = vmul.f32 %v1463_v54, %v911_v19 }
 0x4a6   : > { %v913_v21 = vpop.permute.xlu0 %912 }
 0x4a7   : > { %1004 = vmatpush1.bf16.msra.mxu0 %v899_v20  ;;  %v920_v40 = vmul.f32 %v1463_v54, %v913_v21 }
 0x4a8   : > { %v924_v22 = vpop.permute.xlu1 %923  ;;  %1005 = vmatprep.subr.bf16.mxu0 %v1257_v2 }
 0x4a9   : > { %v921_v25 = vpack.c.bf16 %v920_v40, %v919_v24  ;;  %v932_v28 = vmul.f32 %v1474_v59, %v924_v22 }
 0x4aa   : > { %v926_v23 = vpop.permute.xlu0 %925 }
 0x4ab   : > { %1006 = vmatpush1.bf16.msra.mxu0 %v908_v55  ;;  %v933_v46 = vmul.f32 %v1474_v59, %v926_v23 }
 0x4ac   : > { %1007 = vmatprep.subr.bf16.mxu0 %v1257_v2  ;;  %v937_v26 = vpop.permute.xlu1 %936 }
 0x4ad   : > { %v934_v29 = vpack.c.bf16 %v933_v46, %v932_v28  ;;  %v945_v33 = vmul.f32 %v1482_v3, %v937_v26 }
 0x4ae   : > { %v939_v27 = vpop.permute.xlu0 %938 }
 0x4af   : > { %1008 = vmatpush1.bf16.msra.mxu0 %v921_v25  ;;  %v946_v31 = vmul.f32 %v1482_v3, %v939_v27 }
 0x4b0   : > { %1009 = vmatprep.subr.bf16.mxu0 %v1257_v2  ;;  %v950_v54 = vpop.permute.xlu1 %949 }
 0x4b1   : > { %v947_v34 = vpack.c.bf16 %v946_v31, %v945_v33  ;;  %v958_v37 = vmul.f32 %v1490_v9, %v950_v54 }
 0x4b2   : > { %v952_v32 = vpop.permute.xlu0 %951 }
 0x4b3   : > { %1010 = vmatpush1.bf16.msra.mxu0 %v934_v29  ;;  %v959_v36 = vmul.f32 %v1490_v9, %v952_v32 }
 0x4b4   : > { %1011 = vmatprep.subr.bf16.mxu0 %v1257_v2 }
 0x4b5   : > { %v960_v59 = vpack.c.bf16 %v959_v36, %v958_v37 }
 0x4b7   : > { %1012 = vmatpush1.bf16.msra.mxu0 %v947_v34 }
 0x4b8   : > { %1013 = vmatprep.subr.bf16.mxu0 %v1257_v2  ;;  %v1040_v2 = vld [vmem:[%s1598_s12] sm:$0xf] }
 0x4bb   : > { %1014 = vmatpush1.bf16.msra.mxu0 %v960_v59 }
 0x4be   : > { %1030 = vmatmul.mubr.bf16.vlgmr.msra.gmra.mrb[8].mxu0 %v1246_v38 }
 0x4c1   : > { %v978_v3 = vpop.permute.xlu1 %977 }
 0x4c3   : > { %v983_v42 = vpop.permute.xlu0 %982 }
 0x4c5   : > { %v1046_v49 = vpop.permute.xlu1 %1045 }
 0x591   : > { %v1031_v39 = vpop.f32.mrb[8].mxu0 }
 0x592   : > { %v1032_v41 = vadd.f32 %v1031_v39, %v978_v3  ;;  %v1033_v0 = vpop.f32.mrb[9].mxu0 }
 0x593   : > { %v1034_v43 = vpop.f32.mrb[10].mxu0 }
 0x594   : > { %v1035_v44 = vadd.f32 %v1034_v43, %v983_v42  ;;  %v1036_v45 = vpop.f32.mrb[11].mxu0  ;;  %v1038_v9 = vmax.f32 %v1032_v41, 0.0 }
 0x596   : > { %v1039_v47 = vmax.f32 %v1035_v44, 0.0 }
 0x598   : > { %v1041_v48 = vpack.c.bf16 %v1039_v47, %v1038_v9 }
 0x59a   : > { %1213 = vmatpush3.bf16.msra.mxu1 %v1041_v48 }
 0x59d   : > { %1215 = vmatmul.mubr.msk.bf16.vlgmr.msra.gmra.mrb[8].mxu1 %vm681_vm3, %v1040_v2 }
 0x670   : > { %v1085_v50 = vpop.f32.mrb[8].mxu1 }
 0x671   : > { %v1086_v51 = vadd.f32 %v1085_v50, %v1046_v49  ;;  %v1216_v52 = vpop.f32.mrb[9].mxu1 }
 0x672   : > { %v1088_v53 = vpop.f32.mrb[10].mxu1 }
 0x673   : > { %v1091_v55 = vadd.f32 %v1086_v51, %v1371_v4  ;;  %v1217_v17 = vpop.f32.mrb[11].mxu1 }
 0x675   : > { %v1092_v56 = vmax.f32 %v1091_v55, 0.0 }
 0x677   : > { %1093 = vst [vmem:[%s462_s27] sm:$0xff] %v1092_v56 }
 0x678 PF: > { %s24_s29 = sadd.s32 1, %s1253_s29  }
 0x679   : > { %p21_p4 = scmp.ge.s32.totalorder %s24_s29, 4  }
 0x67b   :  { %23 = sbr.rel (!%p21_p4) target bundleno = 1 (0x1), region = 106 }

</bundles_post_ra>
